<compile_context>
chip_gen: v7x
topology: tpu7x:2x2x1
jax: 0.10.0
libtpu: 0.0.40
codegen_flags: <defaults>
</compile_context>

<pallas_src>
import functools
import math

import jax
import jax.numpy as jnp
from jax.experimental import pallas as pl
from jax.experimental.pallas import tpu as pltpu


# ---------------------------------------------------------------------------
# Kernel bodies
# ---------------------------------------------------------------------------
def _linear_kernel_f32_out(x_ref, wt_ref, o_ref):
    """x_ref: (tm, tk)  wt_ref: (tk, tn)  o_ref: (tm, tn) f32.

    The output block is resident across the K grid axis (out index_map ignores
    k), so we accumulate directly into it — no scratch, no extra copy/store.
    """
    k = pl.program_id(2)

    @pl.when(k == 0)
    def _():
        o_ref[...] = jnp.zeros_like(o_ref)

    o_ref[...] += jnp.dot(
        x_ref[...], wt_ref[...], preferred_element_type=jnp.float32
    )


def _linear_kernel_acc(x_ref, wt_ref, o_ref, acc_ref):
    """Same matmul with an f32 scratch accumulator; used when the output
    dtype is narrower than f32 (e.g. bf16 outputs)."""
    k = pl.program_id(2)

    @pl.when(k == 0)
    def _():
        acc_ref[...] = jnp.zeros_like(acc_ref)

    acc_ref[...] += jnp.dot(
        x_ref[...], wt_ref[...], preferred_element_type=jnp.float32
    )

    @pl.when(k == pl.num_programs(2) - 1)
    def _():
        o_ref[...] = acc_ref[...].astype(o_ref.dtype)


# ---------------------------------------------------------------------------
# Planning helpers
# ---------------------------------------------------------------------------
def _round_up(x: int, m: int) -> int:
    return ((x + m - 1) // m) * m


def _vmem_capacity_bytes() -> int:
    """Per-TensorCore VMEM capacity, with graceful fallbacks."""
    try:
        info = pltpu.get_tpu_info()
        cap = int(getattr(info, "vmem_capacity_bytes", 0) or 0)
        if cap > 0:
            return cap
    except Exception:
        pass
    try:
        kind = jax.devices()[0].device_kind.lower()
        if "7" in kind:                      # v7x: 64 MiB per TensorCore
            return 64 * 1024 * 1024
        return 128 * 1024 * 1024             # v5e / v5p / v6e
    except Exception:
        return 64 * 1024 * 1024              # conservative default


def _tile_targets(vmem_budget: int, compute_itemsize: int):
    """Target tile sizes (tm, tk, tn) given the scoped-VMEM budget."""
    if vmem_budget >= 80 * 1024 * 1024:      # v5e / v6e (128 MiB VMEM)
        tm_t, tk_t, tn_t = 1024, 1024, 1024
    else:                                    # v7x (64 MiB VMEM) or unknown
        tm_t, tk_t, tn_t = 512, 1024, 512
    if compute_itemsize <= 2:                # bf16 operands: wider K strips
        tk_t *= 2
    return tm_t, tk_t, tn_t


def _choose_tile(dim: int, base: int, target: int):
    """Return (tile, padded_dim): tile % base == 0 and tile divides padded_dim.

    Prefers divisors of the minimally-padded dim (so no extra jnp.pad pass);
    only pads further when no reasonably large divisor exists.
    """
    target = max(base, (target // base) * base)
    padded_min = _round_up(dim, base)
    if padded_min <= target:
        return padded_min, padded_min          # one tile covers the whole dim
    t = target
    while t >= base:                           # largest divisor <= target
        if padded_min % t == 0:
            break
        t -= base
    if t >= max(base, target // 2):
        return t, padded_min                   # good divisor, no extra padding
    return target, _round_up(dim, target)      # pad up to a target multiple


# ---------------------------------------------------------------------------
# Per-call apply (weight already prepared: transposed, padded, cast)
# ---------------------------------------------------------------------------
def _linear_apply_prepared(x, wt, *, d_in, d_out, k_pad, n_pad, tk, tn,
                           compute_dtype, vmem_budget):
    out_dtype = x.dtype
    lead = x.shape[:-1]
    m = int(math.prod(lead)) if lead else 1

    x2d = x.reshape(m, d_in)
    if x2d.dtype != compute_dtype:
        x2d = x2d.astype(compute_dtype)

    isz_c = jnp.dtype(compute_dtype).itemsize
    isz_o = jnp.dtype(out_dtype).itemsize

    # M tiling: bf16 packs 2 rows per sublane -> 16-row granularity.
    m_base = 16 if isz_c <= 2 else 8
    tm_t, _, _ = _tile_targets(vmem_budget, isz_c)
    tm, m_pad = _choose_tile(m, m_base, tm_t)

    # Megacore: ensure at least 2 parallel (i, j) grid points so v7x's two
    # TensorCores both get work.  Split N if lane-dense halves exist, else M.
    tm_eff, tn_eff = tm, tn
    if (m_pad // tm) * (n_pad // tn) < 2:
        if tn_eff % 256 == 0:
            tn_eff //= 2
        elif tm_eff % (2 * m_base) == 0:
            tm_eff //= 2

    if (m_pad, k_pad) != (m, d_in):
        x2d = jnp.pad(x2d, ((0, m_pad - m), (0, k_pad - d_in)))

    grid = (m_pad // tm_eff, n_pad // tn_eff, k_pad // tk)
    grid_m, grid_n, _ = grid

    if out_dtype == jnp.float32:
        kernel = _linear_kernel_f32_out
        scratch_shapes = []
    else:
        kernel = _linear_kernel_acc
        scratch_shapes = [pltpu.VMEM((tm_eff, tn_eff), jnp.float32)]

    # Honest tiled-traffic estimate: x streamed grid_n times, weight grid_m
    # times, output written once.
    cost = pl.CostEstimate(
        flops=2 * m_pad * k_pad * n_pad,
        transcendentals=0,
        bytes_accessed=(grid_n * m_pad * k_pad * isz_c
                        + grid_m * k_pad * n_pad * isz_c
                        + m_pad * n_pad * isz_o),
    )

    out2d = pl.pallas_call(
        kernel,
        out_shape=jax.ShapeDtypeStruct((m_pad, n_pad), out_dtype),
        grid_spec=pltpu.PrefetchScalarGridSpec(
            num_scalar_prefetch=0,
            grid=grid,
            in_specs=[
                pl.BlockSpec((tm_eff, tk), lambda i, j, k: (i, k)),
                pl.BlockSpec((tk, tn_eff), lambda i, j, k: (k, j)),
            ],
            out_specs=pl.BlockSpec((tm_eff, tn_eff), lambda i, j, k: (i, j)),
            scratch_shapes=scratch_shapes,
        ),
        compiler_params=pltpu.CompilerParams(
            dimension_semantics=("parallel", "parallel", "arbitrary"),
            vmem_limit_bytes=int(vmem_budget),
        ),
        cost_estimate=cost,
    )(x2d, wt)

    out2d = out2d[:m, :d_out]
    return out2d.reshape(*lead, d_out)


# ---------------------------------------------------------------------------
# Module-like wrapper: prepares the weight exactly once
# ---------------------------------------------------------------------------
class PallasLinear:
    """Pallas-TPU Linear: y = x @ W.T with W of shape [d_out, d_in].

    The weight transpose / padding / optional bf16 cast is done once here;
    per-call work touches only the activation side.  compute_in_bf16=True
    (default, per MXU native rate) keeps an f32 accumulator; pass False for
    the exact f32 semantics of the original PyTorch module.
    """

    def __init__(self, weight: jax.Array, *, compute_in_bf16: bool = True):
        d_out, d_in = weight.shape
        self.d_in = int(d_in)
        self.d_out = int(d_out)
        self.compute_dtype = (jnp.dtype(jnp.bfloat16) if compute_in_bf16
                              else jnp.dtype(weight.dtype))

        # Generation-aware scoped-VMEM budget (~80% of physical per-core VMEM:
        # ~51 MiB on v7x, ~102 MiB on v5e/v6e).
        self._vmem_budget = int(_vmem_capacity_bytes() * 4 // 5)

        isz_c = jnp.dtype(self.compute_dtype).itemsize
        _, tk_t, tn_t = _tile_targets(self._vmem_budget, isz_c)
        self.tk, self.k_pad = _choose_tile(self.d_in, 128, tk_t)
        self.tn, self.n_pad = _choose_tile(self.d_out, 128, tn_t)

        # One-time weight layout plumbing: [d_out, d_in] -> padded [k_pad, n_pad].
        wt = weight.T.astype(self.compute_dtype)
        if (self.k_pad, self.n_pad) != (self.d_in, self.d_out):
            wt = jnp.pad(wt, ((0, self.k_pad - self.d_in),
                              (0, self.n_pad - self.d_out)))
        self._wt = jax.device_put(wt)

        self._fwd = jax.jit(functools.partial(
            _linear_apply_prepared,
            d_in=self.d_in, d_out=self.d_out,
            k_pad=self.k_pad, n_pad=self.n_pad,
            tk=self.tk, tn=self.tn,
            compute_dtype=self.compute_dtype,
            vmem_budget=self._vmem_budget,
        ))

    def __call__(self, x: jax.Array) -> jax.Array:
        assert x.shape[-1] == self.d_in, "in_features mismatch"
        return self._fwd(x, self._wt)


def linear_forward(x: jax.Array, weight: jax.Array,
                   compute_in_bf16: bool = True) -> jax.Array:
    """One-shot convenience wrapper.  Re-prepares the weight every call;
    prefer constructing a PallasLinear once for repeated use."""
    return PallasLinear(weight, compute_in_bf16=compute_in_bf16)(x)


# ---------------------------------------------------------------------------
# Weight init matching the PyTorch module
# ---------------------------------------------------------------------------
def init_linear_weights(key, in_features: int, out_features: int,
                        dtype=jnp.float32) -> jax.Array:
    """Matches torch.nn.init.trunc_normal_(mean=0, std=sigma, a=-3s, b=3s)."""
    sigma = math.sqrt(2.0 / (in_features + out_features))
    w = jax.random.truncated_normal(
        key, lower=-3.0, upper=3.0, shape=(out_features, in_features),
        dtype=jnp.float32,
    ) * sigma
    return w.astype(dtype)


# ---------------------------------------------------------------------------
# Demo / correctness check
# ---------------------------------------------------------------------------
if __name__ == "__main__":
    key = jax.random.PRNGKey(0)
    kx, kw, kx2, kw2 = jax.random.split(key, 4)

    # --- Small case (single output tile), exact f32 path -------------------
    batch, seq, d_in, d_out = 2, 8, 32, 64
    x = jax.random.normal(kx, (batch, seq, d_in), dtype=jnp.float32)
    w = init_linear_weights(kw, d_in, d_out, dtype=jnp.float32)

    lin = PallasLinear(w, compute_in_bf16=False)
    out = jax.block_until_ready(lin(x))
    ref = jnp.einsum("bsi,oi->bso", x, w)
    assert out.shape == (batch, seq, d_out)
    assert out.dtype == jnp.float32
    assert jnp.allclose(out, ref, atol=1e-5, rtol=1e-5)

    # --- Larger case exercising the multi-tile (M, N, K) grid, K-accumulation
    # --- and the padding/slice path; exact f32 compute ---------------------
    b2, s2, di2, do2 = 2, 256, 2304, 384
    x2 = jax.random.normal(kx2, (b2, s2, di2), dtype=jnp.float32)
    w2 = init_linear_weights(kw2, di2, do2, dtype=jnp.float32)

    lin2_f32 = PallasLinear(w2, compute_in_bf16=False)
    out2 = jax.block_until_ready(lin2_f32(x2))
    ref2 = jnp.einsum("bsi,oi->bso", x2, w2)
    assert out2.shape == (b2, s2, do2)
    assert jnp.allclose(out2, ref2, atol=1e-3, rtol=1e-3)

    # --- Default fast path: bf16 operands, f32 accumulation ----------------
    lin2_bf16 = PallasLinear(w2)  # compute_in_bf16=True by default
    out3 = jax.block_until_ready(lin2_bf16(x2))
    ref3 = jnp.einsum(
        "bsi,oi->bso",
        x2.astype(jnp.bfloat16), w2.astype(jnp.bfloat16),
        preferred_element_type=jnp.float32,
    )
    assert out3.shape == (b2, s2, do2)
    assert out3.dtype == jnp.float32
    assert jnp.allclose(out3, ref3, atol=1e-2, rtol=1e-2)

    print("KERNEL_OK")
</pallas_src>

<mosaic_0001>
module attributes {stable_mosaic.version = 11 : i64} {
  func.func @_linear_kernel_f32_out(%arg0: i32, %arg1: i32, %arg2: i32, %arg3: memref<8x128xf32, #tpu.memory_space<vmem>>, %arg4: memref<128x128xf32, #tpu.memory_space<vmem>>, %arg5: memref<8x128xf32, #tpu.memory_space<vmem>>) attributes {dimension_semantics = [#tpu.dimension_semantics<parallel>, #tpu.dimension_semantics<parallel>, #tpu.dimension_semantics<arbitrary>], iteration_bounds = array<i64: 2, 1, 1>, scalar_prefetch = 0 : i64, scratch_operands = 0 : i64, tpu.core_type = #tpu.core_type<tc>, window_params = [{transform_indices = @transform_0, window_bounds = array<i64: 8, 128>}, {transform_indices = @transform_1, window_bounds = array<i64: 128, 128>}, {transform_indices = @transform_2, window_bounds = array<i64: 8, 128>}]} {
    %c0_i32 = arith.constant 0 : i32
    %0 = arith.cmpi eq, %arg2, %c0_i32 : i32
    %1 = arith.extui %0 : i1 to i32
    %c0_i32_0 = arith.constant 0 : i32
    %2 = arith.cmpi ne, %1, %c0_i32_0 : i32
    scf.if %2 {
      %cst_8 = arith.constant 0.000000e+00 : f32
      %9 = vector.broadcast %cst_8 : f32 to vector<8x128xf32>
      %c0_9 = arith.constant 0 : index
      %c0_10 = arith.constant 0 : index
      %10 = vector.load %arg5[%c0_9, %c0_10] : memref<8x128xf32, #tpu.memory_space<vmem>>, vector<8x128xf32>
      tpu.vector_store %arg5[%c0_9, %c0_10], %9 {strides = array<i32>} : memref<8x128xf32, #tpu.memory_space<vmem>>, vector<8x128xf32>,
    } else {
    }
    %c0 = arith.constant 0 : index
    %c0_1 = arith.constant 0 : index
    %3 = vector.load %arg5[%c0, %c0_1] : memref<8x128xf32, #tpu.memory_space<vmem>>, vector<8x128xf32>
    %c0_2 = arith.constant 0 : index
    %c0_3 = arith.constant 0 : index
    %4 = vector.load %arg3[%c0_2, %c0_3] : memref<8x128xf32, #tpu.memory_space<vmem>>, vector<8x128xf32>
    %c0_4 = arith.constant 0 : index
    %c0_5 = arith.constant 0 : index
    %5 = vector.load %arg4[%c0_4, %c0_5] : memref<128x128xf32, #tpu.memory_space<vmem>>, vector<128x128xf32>
    %cst = arith.constant dense<0.000000e+00> : vector<8x128xf32>
    %6 = tpu.matmul %4, %5, %cst {dimension_numbers = #tpu.dot_dimension_numbers<[1], [0], [0], [1], [0, 0, 1, 1], [], []>} : vector<8x128xf32>, vector<128x128xf32>, vector<8x128xf32> -> vector<8x128xf32>
    %7 = arith.addf %3, %6 : vector<8x128xf32>
    %c0_6 = arith.constant 0 : index
    %c0_7 = arith.constant 0 : index
    %8 = vector.load %arg5[%c0_6, %c0_7] : memref<8x128xf32, #tpu.memory_space<vmem>>, vector<8x128xf32>
    tpu.vector_store %arg5[%c0_6, %c0_7], %7 {strides = array<i32>} : memref<8x128xf32, #tpu.memory_space<vmem>>, vector<8x128xf32>,
    return
  }
  func.func @transform_0(%arg0: i32, %arg1: i32, %arg2: i32) -> (i32, i32) {
    %c0_i32 = arith.constant 0 : i32
    return %arg0, %arg2 : i32, i32
  }
  func.func @transform_1(%arg0: i32, %arg1: i32, %arg2: i32) -> (i32, i32) {
    %c0_i32 = arith.constant 0 : i32
    return %arg2, %arg1 : i32, i32
  }
  func.func @transform_2(%arg0: i32, %arg1: i32, %arg2: i32) -> (i32, i32) {
    %c0_i32 = arith.constant 0 : i32
    return %arg0, %arg1 : i32, i32
  }
}

</mosaic_0001>

<bundles_post_ra>
// kernel: _linear_apply_prepared.1
= control target key start
LH: loop header
LB: loop body
LE: loop exit
PB: predicated region body
PF: predicated region fallthrough
CT: control target
= control target key end

     0   :  { %7 = vsyncpa [#allocation3], 0  ;;  %s976_s0 = inlined_call_operand.hbm [shape: f32[16,128], index: 0, kind: input, shape index: {}]   ;;  %s977_s1 = inlined_call_operand.hbm [shape: f32[128,128], index: 1, kind: input, shape index: {}]   ;;  %s978_s2 = inlined_call_operand.hbm [shape: f32[16,128], index: 2, kind: output, shape index: {}]  }
   0x1   :  { %9 = vsyncpa [#allocation3 + $0x1], 0 }
   0x2   :  { %10 = vsyncpa [#allocation6], 0 }
   0x3   :  { %11 = vsyncpa [#allocation4], 0 }
   0x4   :  { %13 = vsyncpa [#allocation4 + $0x1], 0  ;;  %s755_s9 = smov 0   ;;  %s757_s10 = smov 0  }
   0x5   :  { %s759_s11 = smov 0   ;;  %s761_s12 = smov 0  }
   0x6   :  { %s763_s13 = smov 0   ;;  %s765_s14 = smov 0  }
   0x7 LB: > { %s417_s15 = sadd.s32 4294967295, %s730_s14   ;;  %s418_s16 = sadd.s32 4294967294, %s730_s14   ;;  %s730_s14 = sphi %s765_s14, %s19_s14   ;;  %s726_s13 = sphi %s763_s13, %s1002_s13   ;;  %s722_s12 = sphi %s761_s12, %s1001_s12   ;;  %s718_s11 = sphi %s759_s11, %s1000_s11   ;;  %s714_s10 = sphi %s757_s10, %s999_s10   ;;  %s710_s9 = sphi %s755_s9, %s998_s9  }
   0x8   : > { %p60_p0 = scmp.ne.s32.totalorder %s714_s10, %s710_s9  ;;  %p789_p1 = scmp.eq.s32.totalorder %s417_s15, 0 }
   0x9   : > { %p793_p2 = scmp.eq.s32.totalorder %s417_s15, 1  ;;  %p120_p3 = scmp.eq.s32.totalorder %s418_s16, 1 }
   0xa   : > { %s983_s17 = scalar_select %p789_p1, 1, 0 }
   0xb   : > { %s984_s18 = scalar_select %p793_p2, 1, 0 }
   0xc   : > { %p799_p4 = por %p789_p1, %p60_p0  ;;  %p419_p5 = scmp.ge.s32.totalorder %s730_s14, 1 }
   0xd   : > { %p804_p6 = por %p120_p3, %p60_p0  ;;  %p127_p7 = scmp.lt.s32.totalorder %s730_s14, 3 }
   0xe   : > { %s985_s19 = scalar_select %p799_p4, 1, 0 }
   0xf   : > { %s986_s20 = scalar_select %p804_p6, 1, 0 }
  0x10   : > { %p809_p8 = pnand %p419_p5, %p127_p7  ;;  %s732_s22 = smov [#allocation5]  }
  0x11   : > { %s143_s23 = sshll.u32 %s732_s22, 4  ;;  %s38_s25 = sadd.s32 1, %s726_s13  ;;  %s144_s23 = int_to_ptr.vmem [resolvable:$true] %s143_s23 }
  0x12   : > { %s987_s21 = scalar_select %p809_p8, 1, 0 }
  0x13   : > { %p516_p9 = pneg %p809_p8  ;;  %s586_s28 = scalar_lea.hbm %s977_s1, 2048 }
  0x14   : > { %p587_p12 = scmp.ne.s32.totalorder %s977_s1, %s586_s28  ;;  %p593_p5 = scmp.lt.u32.totalorder %s586_s28, %s977_s1 }
  0x15   : > { %p818_p11 = pnand %p516_p9, %p789_p1 }
  0x17   : > { %p588_p13 = pneg %p818_p11 }
  0x19   : > { %p589_p0 = pnand %p588_p13, %p587_p12 }
  0x1b   : > { %p590_p3 = pneg %p589_p0 }
  0x1d   : > { %p595_p7 = pnand %p593_p5, %p590_p3 }
  0x1f   : > { %598 = shalt.err (!%p595_p7)
}
  0x20   : > { %s599_s5 = scalar_lea.vmem %s144_s23, 2048  ;;  %p607_p1 = scmp.lt.s32.totalorder %s144_s23, %s144_s23 }
  0x21   : > { %p600_p9 = scmp.ne.s32.totalorder %s144_s23, %s599_s5  ;;  %p608_p4 = scmp.lt.s32.totalorder %s599_s5, %s599_s5 }
  0x23   : > { %p602_p10 = pnand %p600_p9, %p588_p13  ;;  %p609_p8 = por %p608_p4, %p607_p1 }
  0x25   : > { %p603_p6 = pneg %p602_p10 }
  0x27   : > { %p610_p2 = pnand %p609_p8, %p603_p6 }
  0x29   : > { %613 = shalt.err (!%p610_p2)
}
  0x2a   : > { %s733_s6 = smov 128   ;;  %s734_s7 = smov 8  }
  0x2b   : > { %519 = dma.hbm_to_vmem [thread:$0]  (!%p818_p11), %s977_s1, 2048, %s144_s23, [#allocation6], %s733_s6, %s733_s6, %s734_s7  }
  0x2c   : > { %p40_p1 = scmp.ge.s32.totalorder %s38_s25, 2  ;;  %s47_s16 = sadd.s32 1, %s718_s11 }
  0x2d   : > { %p54_p2 = scmp.ne.s32.totalorder %s718_s11, %s714_s10  ;;  %p55_p4 = scmp.eq.s32.totalorder %s730_s14, 0 }
  0x2e   : > { %s1004_s25 = smov (%p40_p1, %s38_s25), 0  ;;  %p990_p8 = scmp.ne.s32.totalorder %s984_s18, 0 }
  0x2f   : > { %p845_p6 = por %p55_p4, %p54_p2  ;;  %s42_s24 = ssub.s32 %s726_s13, %s1004_s25 }
  0x30   : > { %p851_p10 = por %p990_p8, %p54_p2  ;;  %p529_p12 = scmp.lt.s32.totalorder %s730_s14, 2 }
  0x31   : > { %p45_p11 = scmp.eq.s32.totalorder %s42_s24, 0  ;;  %s157_s23 = sand.u32 1, %s718_s11  }
  0x32   : > { %s422_s27 = sshll.u32 %s157_s23, 3  ;;  %s423_s29 = sshll.u32 %s726_s13, 7 }
  0x33   : > { %s860_s28 = scalar_select %p45_p11, %s718_s11, %s47_s16  }
  0x34   : > { %s866_s4 = scalar_lea.hbm %s976_s0, %s423_s29  ;;  %s161_s18 = scalar_lea.vmem [#allocation2], %s422_s27 }
  0x35   : > { %s169_s5 = sshll.u32 %s161_s18, 4  ;;  %p872_p13 = pnand %p529_p12, %p845_p6  ;;  %s868_s5 = int_to_ptr.vmem [resolvable:$true] %s169_s5 }
  0x36   : > { %s158_s7 = scalar_lea.sflag [#allocation3], %s157_s23  ;;  %s614_s8 = scalar_lea.hbm %s866_s4, 128 }
  0x37   : > { %p615_p0 = scmp.ne.s32.totalorder %s866_s4, %s614_s8  ;;  %p616_p3 = pneg %p872_p13 }
  0x38   : > { %s619_s24 = scalar_lea.hbm %s976_s0, 256  ;;  %p620_p9 = scmp.lt.u32.totalorder %s866_s4, %s976_s0 }
  0x39   : > { %p617_p5 = pnand %p616_p3, %p615_p0  ;;  %p621_p1 = scmp.lt.u32.totalorder %s619_s24, %s614_s8 }
  0x3a   : > { %p623_p4 = scmp.lt.u32.totalorder %s614_s8, %s866_s4 }
  0x3b   : > { %p618_p7 = pneg %p617_p5  ;;  %p622_p2 = por %p621_p1, %p620_p9 }
  0x3d   : > { %p624_p6 = por %p623_p4, %p622_p2 }
  0x3f   : > { %p625_p8 = pnand %p624_p6, %p618_p7 }
  0x41   : > { %628 = shalt.err (!%p625_p8)
}
  0x42   : > { %s629_s23 = scalar_lea.vmem %s868_s5, 128  ;;  %s735_s29 = smov [#allocation2]  }
  0x43   : > { %p630_p12 = scmp.ne.s32.totalorder %s868_s5, %s629_s23  ;;  %s634_s30 = sshll.u32 %s735_s29, 4  ;;  %s635_s30 = int_to_ptr.vmem [resolvable:$false] %s634_s30 }
  0x44   : > { %s636_s3 = scalar_lea.vmem %s635_s30, 256  ;;  %p637_p5 = scmp.lt.s32.totalorder %s868_s5, %s635_s30 }
  0x45   : > { %p632_p11 = pnand %p630_p12, %p616_p3  ;;  %p638_p9 = scmp.lt.s32.totalorder %s636_s3, %s629_s23 }
  0x47   : > { %p633_p0 = pneg %p632_p11  ;;  %p639_p1 = por %p638_p9, %p637_p5 }
  0x49   : > { %p640_p2 = pnand %p639_p1, %p633_p0 }
  0x4b   : > { %643 = shalt.err (!%p640_p2)
}
  0x4c   : > { %523 = dma.hbm_to_vmem [thread:$0]  (!%p872_p13), %s866_s4, 128, %s868_s5, %s158_s7  }
  0x4d   : > { %p993_p7 = scmp.ne.s32.totalorder %s987_s21, 0 }
  0x4e   : > { %s904_s18 = sand.u32 (!%p993_p7), 1, %s714_s10   ;;  %p994_p3 = scmp.ne.s32.totalorder (!%p993_p7), %s985_s19, 0 }
  0x4f   : > { %178 = sbr.rel (%p993_p7) target bundleno = 351 (0x15f), region = 28  ;;  %s425_s8 = sshll.u32 (!%p993_p7), %s904_s18, 3 }
  0x50   : > { %s181_s15 = scalar_lea.sflag (!%p993_p7), [#allocation3], %s904_s18  ;;  %s910_s16 = scalar_lea.vmem (!%p993_p7), [#allocation2], %s425_s8 }
  0x56   : > { %697 = dma.done.wait (%p994_p3), %s181_s15, 128  }
  0x57   : > { %699 = vsyncadd (%p994_p3), %s181_s15, 4294967168  ;;  %p995_p13 = scmp.ne.s32.totalorder %s983_s17, 0 }
  0x59   : > { %701 = dma.done.wait (%p995_p13), [#allocation6], 2048  }
  0x5a   : > { %703 = vsyncadd (%p995_p13), [#allocation6], 4294965248  ;;  %v736_v0 = vmov 0.0|0.0   ;;  %vm737_vm0 = vmmov 0   ;;  %v738_v1 = vmov 0.0   ;;  %v217_v2 = vld [vmem:[#allocation5] sm:$0xff] }
  0x5b   : > { %484 = vmatprep.subr.bf16.mxu0 %v736_v0  ;;  %481 = vmatprep.mubr.msk.f32.mxu0 %vm737_vm0, %v738_v1  ;;  %v218_v3 = vld [vmem:[#allocation5 + $0x8] sm:$0xff]  ;;  %v219_v4 = vld [vmem:[#allocation5 + $0x10] sm:$0xff]  ;;  %v220_v6 = vld [vmem:[#allocation5 + $0x18] sm:$0xff]  ;;  %s429_s17 = sshll.u32 %s722_s12, 7  ;;  %s208_s19 = scalar_lea.vmem [#allocation7], %s425_s8 }
  0x5c   : > { %v485_v5 = vpack.c.bf16 %v218_v3, %v217_v2  ;;  %v488_v7 = vpack.c.bf16 %v220_v6, %v219_v4  ;;  %v221_v8 = vld [vmem:[#allocation5 + $0x20] sm:$0xff]  ;;  %v222_v9 = vld [vmem:[#allocation5 + $0x28] sm:$0xff]  ;;  %v223_v11 = vld [vmem:[#allocation5 + $0x30] sm:$0xff]  ;;  %s320_s21 = sshll.u32 %s208_s19, 4  ;;  %s927_s6 = scalar_lea.hbm %s978_s2, %s429_s17  ;;  %s929_s21 = int_to_ptr.vmem [resolvable:$true] %s320_s21 }
  0x5d   : > { %v491_v10 = vpack.c.bf16 %v222_v9, %v221_v8  ;;  %v224_v12 = vld [vmem:[#allocation5 + $0x38] sm:$0xff]  ;;  %v225_v14 = vld [vmem:[#allocation5 + $0x40] sm:$0xff]  ;;  %v226_v15 = vld [vmem:[#allocation5 + $0x48] sm:$0xff]  ;;  %s306_s7 = scalar_lea.sflag [#allocation4], %s904_s18  ;;  %s644_s24 = scalar_lea.vmem %s929_s21, 128 }
  0x5e   : > { %486 = vmatpush3.bf16.msra.mxu0 %v485_v5  ;;  %v494_v13 = vpack.c.bf16 %v224_v12, %v223_v11  ;;  %v497_v16 = vpack.c.bf16 %v226_v15, %v225_v14  ;;  %v227_v17 = vld [vmem:[#allocation5 + $0x50] sm:$0xff]  ;;  %v228_v18 = vld [vmem:[#allocation5 + $0x58] sm:$0xff]  ;;  %v229_v20 = vld [vmem:[#allocation5 + $0x60] sm:$0xff]  ;;  %p645_p4 = scmp.ne.s32.totalorder %s929_s21, %s644_s24  ;;  %s739_s12 = smov [#allocation7]  }
  0x5f   : > { %487 = vmatprep.subr.bf16.mxu0 %v736_v0  ;;  %v500_v19 = vpack.c.bf16 %v228_v18, %v227_v17  ;;  %v230_v21 = vld [vmem:[#allocation5 + $0x68] sm:$0xff]  ;;  %v231_v23 = vld [vmem:[#allocation5 + $0x70] sm:$0xff]  ;;  %v232_v24 = vld [vmem:[#allocation5 + $0x78] sm:$0xff]  ;;  %s648_s22 = sshll.u32 %s739_s12, 4  ;;  %s649_s22 = int_to_ptr.vmem [resolvable:$false] %s648_s22 }
  0x60   : > { %v503_v22 = vpack.c.bf16 %v230_v21, %v229_v20  ;;  %v506_v25 = vpack.c.bf16 %v232_v24, %v231_v23  ;;  %v216_v26 = vld [vmem:[%s910_s16] sm:$0xff]  ;;  %p646_p6 = pnand %p645_p4, %p851_p10  ;;  %s650_s27 = scalar_lea.vmem %s649_s22, 256 }
  0x61   : > { %p651_p12 = scmp.lt.s32.totalorder %s929_s21, %s649_s22  ;;  %p652_p11 = scmp.lt.s32.totalorder %s650_s27, %s644_s24 }
  0x62   : > { %489 = vmatpush3.bf16.msra.mxu0 %v488_v7  ;;  %p647_p8 = pneg %p646_p6 }
  0x63   : > { %490 = vmatprep.subr.bf16.mxu0 %v736_v0  ;;  %p653_p0 = por %p652_p11, %p651_p12 }
  0x65   : > { %p654_p5 = pnand %p653_p0, %p647_p8 }
  0x66   : > { %492 = vmatpush3.bf16.msra.mxu0 %v491_v10 }
  0x67   : > { %493 = vmatprep.subr.bf16.mxu0 %v736_v0 }
  0x6a   : > { %495 = vmatpush3.bf16.msra.mxu0 %v494_v13 }
  0x6b   : > { %496 = vmatprep.subr.bf16.mxu0 %v736_v0 }
  0x6e   : > { %498 = vmatpush3.bf16.msra.mxu0 %v497_v16 }
  0x6f   : > { %499 = vmatprep.subr.bf16.mxu0 %v736_v0 }
  0x72   : > { %501 = vmatpush3.bf16.msra.mxu0 %v500_v19 }
  0x73   : > { %502 = vmatprep.subr.bf16.mxu0 %v736_v0 }
  0x76   : > { %504 = vmatpush3.bf16.msra.mxu0 %v503_v22 }
  0x77   : > { %505 = vmatprep.subr.bf16.mxu0 %v736_v0 }
  0x7a   : > { %507 = vmatpush3.bf16.msra.mxu0 %v506_v25 }
  0x7d   : > { %482 = vmatmul.mubr.f32.vlgmr.msra.gmra.mrb[0].mxu0 %v216_v26 }
 0x150   : > { %v299_v27 = vpop.f32.mrb[0].mxu0 }
 0x151   : > { %v483_v28 = vpop.f32.mrb[1].mxu0  ;;  %304 = vst [vmem:[%s208_s19] sm:$0xff] %v299_v27 }
 0x152   : > { %657 = shalt.err (!%p654_p5)
}
 0x153   : > { %s658_s23 = scalar_lea.hbm %s927_s6, 128  ;;  %s662_s3 = scalar_lea.hbm %s978_s2, 256 }
 0x154   : > { %p659_p9 = scmp.ne.s32.totalorder %s927_s6, %s658_s23  ;;  %p663_p7 = scmp.lt.u32.totalorder %s927_s6, %s978_s2 }
 0x155   : > { %p664_p3 = scmp.lt.u32.totalorder %s662_s3, %s658_s23  ;;  %p666_p4 = scmp.lt.u32.totalorder %s658_s23, %s927_s6 }
 0x156   : > { %p660_p1 = pnand %p659_p9, %p851_p10 }
 0x157   : > { %p665_p13 = por %p664_p3, %p663_p7 }
 0x158   : > { %p661_p2 = pneg %p660_p1 }
 0x159   : > { %p667_p6 = por %p666_p4, %p665_p13 }
 0x15b   : > { %p668_p8 = pnand %p667_p6, %p661_p2 }
 0x15d   : > { %671 = shalt.err (!%p668_p8)
}
 0x15e   : > { %514 = dma.vmem_to_hbm [thread:$0]  (%p851_p10), %s929_s21, 128, %s927_s6, %s306_s7  }
 0x15f PF: > { %s332_s15 = sand.u32 1, %s710_s9   ;;  %p996_p12 = scmp.ne.s32.totalorder %s986_s20, 0 }
 0x160   : > { %p997_p11 = scmp.ge.s32.totalorder %s730_s14, 2  ;;  %s333_s16 = scalar_lea.sflag [#allocation4], %s332_s15 }
 0x162   : > { %p525_p0 = pnand %p997_p11, %p996_p12 }
 0x164   : > { %705 = dma.done.wait (!%p525_p0), %s333_s16, 128  }
 0x165   : > { %707 = vsyncadd (!%p525_p0), %s333_s16, 4294967168  ;;  %s19_s14 = sadd.s32 1, %s730_s14   ;;  %s998_s9 = smov %s714_s10 }
 0x166   : > { %p16_p5 = scmp.ge.s32.totalorder %s19_s14, 4   ;;  %s999_s10 = smov %s718_s11 }
 0x167   : > { %s1000_s11 = smov %s860_s28  ;;  %s1001_s12 = smov %s726_s13 }
 0x168   : > { %s1002_s13 = smov %s1004_s25  ;;  %18 = sbr.rel (!%p16_p5) target bundleno = 7 (0x7), region = 82 }
 0x16f   :  { %338 = vsyncpa [#allocation3], 1 }
 0x170   :  { %340 = vsyncpa [#allocation3 + $0x1], 1 }
 0x171   :  { %341 = vsyncpa [#allocation6], 1 }
 0x172   :  { %342 = vsyncpa [#allocation4], 1 }
 0x173   :  { %344 = vsyncpa [#allocation4 + $0x1], 1 }

</bundles_post_ra>
